<compile_context>
chip_gen: v5e
topology: v5e:2x2
jax: 0.10.0
libtpu: 0.0.40
codegen_flags: <defaults>
</compile_context>

<pallas_src>
from typing import Any, Dict

import jax
import jax.numpy as jnp
from jax.experimental import pallas as pl
from jax.experimental.pallas import tpu as pltpu


_LANE_CAP = 4096  # lane-dense last-dim cap (multiple of 128)


# TODO(synk): BaseModel.forward raises NotImplementedError in PyTorch; there is
# no concrete computation to translate. The kernel below is an identity
# pass-through TEMPLATE that subclass compute would replace. Keep subclass
# compute streaming over the (block_rows, lane) tile (whole-ref ops or
# pl.ds-chunked slices of ~512 lanes); do not materialize full-tile
# intermediates (a multi-MiB tile vastly exceeds the 64x4KiB vreg file).
def _identity_kernel(x_ref, o_ref):
    o_ref[...] = x_ref[...]


def _chip_tile_config():
    """Generation-aware (tile_bytes_target, vmem_limit_bytes)."""
    try:
        kind = jax.devices()[0].device_kind.lower()
    except Exception:
        kind = ""
    if "7" in kind:
        # v7x: 64 MiB physical VMEM, ~3.2 TB/s HBM -> bigger tiles, explicit
        # scoped-VMEM headroom (4x tile double-buffered ~ 24 MiB < 40 MiB).
        return 6 << 20, 40 << 20
    if "v6" in kind:
        # v6e: 4 MiB tiles (4x = 16 MiB, inside 32 MiB default scoped VMEM).
        return 4 << 20, None
    # v5e / unknown: 2 MiB tiles keep 4x tile well under the 16 MiB default.
    return 2 << 20, None


def _flatten_2d(n: int):
    """Largest multiple-of-128 lane width (<= _LANE_CAP) that divides n."""
    if n % 128 != 0:
        return None
    lane = 128
    while lane * 2 <= _LANE_CAP and n % (lane * 2) == 0:
        lane *= 2
    return n // lane, lane


def _sublane_multiple(dtype) -> int:
    itemsize = jnp.dtype(dtype).itemsize
    return {4: 8, 2: 16, 1: 32}.get(itemsize, 8)


def _pick_block_rows(rows: int, lane: int, dtype, tile_bytes: int) -> int:
    sub = _sublane_multiple(dtype)
    itemsize = jnp.dtype(dtype).itemsize
    row_bytes = lane * itemsize
    if rows <= sub:
        return rows  # single full-extent block (allowed by the (8,128) rule)
    target = max(sub, ((tile_bytes // row_bytes) // sub) * sub)
    # Keep >= 2 grid steps whenever possible: DMA overlap + v7x megacore split.
    if rows >= 2 * sub:
        target = min(target, max(sub, ((rows // 2) // sub) * sub))
    target = max(sub, min(target, (rows // sub) * sub))
    # Prefer a block size that divides rows evenly -> unmasked last-tile vst.
    b = target
    while b >= sub:
        if rows % b == 0:
            return b
        b -= sub
    return target  # no clean divisor: final grid step is a masked partial tile


@jax.jit
def _identity_template(x: jnp.ndarray) -> jnp.ndarray:
    """Pallas identity template (subclass compute slots into _identity_kernel)."""
    orig_shape = x.shape
    n = int(x.size)

    flat = _flatten_2d(n)
    if flat is None:
        # TODO(synk): once a subclass adds real compute, pad the flattened
        # array to a multiple of 128 (and crop after) instead of bypassing the
        # kernel; harmless for the identity base class.
        return x

    rows, lane = flat
    tile_bytes, vmem_limit = _chip_tile_config()
    block_rows = _pick_block_rows(rows, lane, x.dtype, tile_bytes)
    grid_rows = pl.cdiv(rows, block_rows)
    itemsize = jnp.dtype(x.dtype).itemsize

    x2 = x.reshape(rows, lane)  # metadata-only under jit

    out2 = pl.pallas_call(
        _identity_kernel,
        out_shape=jax.ShapeDtypeStruct((rows, lane), x.dtype),
        grid=(grid_rows,),
        in_specs=[pl.BlockSpec((block_rows, lane), lambda i: (i, 0))],
        out_specs=pl.BlockSpec((block_rows, lane), lambda i: (i, 0)),
        cost_estimate=pl.CostEstimate(
            flops=0,
            transcendentals=0,
            bytes_accessed=2 * n * itemsize,
        ),
        compiler_params=pltpu.CompilerParams(
            dimension_semantics=("parallel",),
            vmem_limit_bytes=vmem_limit,
        ),
    )(x2)

    return out2.reshape(orig_shape)


def base_model_forward(x: jnp.ndarray, *, run_kernel_template: bool = False
                       ) -> Dict[str, Any]:
    """Forward for BaseModel.

    The PyTorch base class performs no computation, so the default path
    returns the input untouched (no kernel launch, no HBM traffic). Set
    run_kernel_template=True to exercise the Pallas streaming-copy template
    that subclass compute would fill in.
    """
    if not run_kernel_template:
        return {"x": x}
    return {"x": _identity_template(x)}


def max_positions() -> float:
    """Maximum length supported by the model (matches PyTorch BaseModel)."""
    return 1000000.0


if __name__ == "__main__":
    key = jax.random.PRNGKey(0)
    # Small NCHW example (lane-aligned W): flattens to (16, 4096) -> 2 grid
    # steps of (8, 4096) f32 tiles on the default/v5e config.
    x = jax.random.normal(key, (2, 4, 64, 128), dtype=jnp.float32)

    # Base-class path: zero-cost pass-through.
    y0 = base_model_forward(x)["x"]
    assert y0 is x

    # Template path: run the Pallas kernel once to validate compile + run.
    y = base_model_forward(x, run_kernel_template=True)["x"]
    y = jax.block_until_ready(y)

    assert y.shape == x.shape and y.dtype == x.dtype
    assert bool(jnp.allclose(y, x))
    assert max_positions() == 1000000.0

    print("KERNEL_OK")
</pallas_src>

<mosaic_0001>
module attributes {stable_mosaic.version = 11 : i64} {
  func.func @_identity_kernel(%arg0: i32, %arg1: memref<8x4096xf32, #tpu.memory_space<vmem>>, %arg2: memref<8x4096xf32, #tpu.memory_space<vmem>>) attributes {dimension_semantics = [#tpu.dimension_semantics<parallel>], iteration_bounds = array<i64: 2>, scalar_prefetch = 0 : i64, scratch_operands = 0 : i64, tpu.core_type = #tpu.core_type<tc>, window_params = [{transform_indices = @transform_0, window_bounds = array<i64: 8, 4096>}, {transform_indices = @transform_1, window_bounds = array<i64: 8, 4096>}]} {
    %c0 = arith.constant 0 : index
    %c0_0 = arith.constant 0 : index
    %0 = vector.load %arg1[%c0, %c0_0] : memref<8x4096xf32, #tpu.memory_space<vmem>>, vector<8x4096xf32>
    %c0_1 = arith.constant 0 : index
    %c0_2 = arith.constant 0 : index
    %1 = vector.load %arg2[%c0_1, %c0_2] : memref<8x4096xf32, #tpu.memory_space<vmem>>, vector<8x4096xf32>
    tpu.vector_store %arg2[%c0_1, %c0_2], %0 {strides = array<i32>} : memref<8x4096xf32, #tpu.memory_space<vmem>>, vector<8x4096xf32>,
    return
  }
  func.func @transform_0(%arg0: i32) -> (i32, i32) {
    %c0_i32 = arith.constant 0 : i32
    %c0_i32_0 = arith.constant 0 : i32
    return %arg0, %c0_i32 : i32, i32
  }
  func.func @transform_1(%arg0: i32) -> (i32, i32) {
    %c0_i32 = arith.constant 0 : i32
    %c0_i32_0 = arith.constant 0 : i32
    return %arg0, %c0_i32 : i32, i32
  }
}

</mosaic_0001>

<bundles_post_ra>
// kernel: _identity_template.1
= control target key start
LH: loop header
LB: loop body
LE: loop exit
PB: predicated region body
PF: predicated region fallthrough
CT: control target
= control target key end

     0   :  { %s275_s6 = smov 0   ;;  %s360_s0 = inlined_call_operand.vmem [shape: f32[16,4096], index: 0, kind: input, shape index: {}]   ;;  %s361_s1 = inlined_call_operand.vmem [shape: f32[16,4096], index: 1, kind: output, shape index: {}]  }
   0x1 LB: > { %s236_s7 = sadd.s32 4294967295, %s263_s6   ;;  %p240_p0 = scmp.ge.s32.totalorder %s263_s6, 1  ;;  %s263_s6 = sphi %s275_s6, %s11_s6  }
   0x2   : > { %p87_p1 = scmp.lt.s32.totalorder %s263_s6, 3 }
   0x4   : > { %p88_p2 = pnand %p240_p0, %p87_p1 }
   0x5   : > { %p107_p3 = scmp.lt.s32.totalorder (!%p88_p2), %s236_s7, 1 }
   0x6   : > { %91 = sbr.rel (%p88_p2) target bundleno = 47 (0x2f), region = 24 }
   0xb   : > { %s363_s7 = smov (!%p107_p3, %s236_s7), 1 }
   0xc   : > { %s247_s8 = sshll.u32 %s363_s7, 8 }
   0xd   : > { %s286_s11 = scalar_lea.vmem %s360_s0, %s247_s8  ;;  %s291_s14 = scalar_lea.vmem %s361_s1, %s247_s8 }
   0xe   : > { %v117_v0 = vld [vmem:[%s286_s11] sm:$0xff]  ;;  %v118_v1 = vld [vmem:[%s286_s11 + $0x8] sm:$0xff]  ;;  %v119_v2 = vld [vmem:[%s286_s11 + $0x10] sm:$0xff] }
   0xf   : > { %149 = vst [vmem:[%s291_s14] sm:$0xff] %v117_v0  ;;  %v120_v3 = vld [vmem:[%s286_s11 + $0x18] sm:$0xff]  ;;  %v121_v4 = vld [vmem:[%s286_s11 + $0x20] sm:$0xff]  ;;  %v122_v5 = vld [vmem:[%s286_s11 + $0x28] sm:$0xff] }
  0x10   : > { %150 = vst [vmem:[%s291_s14 + $0x8] sm:$0xff] %v118_v1  ;;  %v123_v6 = vld [vmem:[%s286_s11 + $0x30] sm:$0xff]  ;;  %v124_v7 = vld [vmem:[%s286_s11 + $0x38] sm:$0xff]  ;;  %v125_v8 = vld [vmem:[%s286_s11 + $0x40] sm:$0xff] }
  0x11   : > { %151 = vst [vmem:[%s291_s14 + $0x10] sm:$0xff] %v119_v2  ;;  %v126_v9 = vld [vmem:[%s286_s11 + $0x48] sm:$0xff]  ;;  %v127_v10 = vld [vmem:[%s286_s11 + $0x50] sm:$0xff]  ;;  %v128_v11 = vld [vmem:[%s286_s11 + $0x58] sm:$0xff] }
  0x12   : > { %152 = vst [vmem:[%s291_s14 + $0x18] sm:$0xff] %v120_v3  ;;  %v129_v12 = vld [vmem:[%s286_s11 + $0x60] sm:$0xff]  ;;  %v130_v13 = vld [vmem:[%s286_s11 + $0x68] sm:$0xff]  ;;  %v131_v14 = vld [vmem:[%s286_s11 + $0x70] sm:$0xff] }
  0x13   : > { %153 = vst [vmem:[%s291_s14 + $0x20] sm:$0xff] %v121_v4  ;;  %v132_v15 = vld [vmem:[%s286_s11 + $0x78] sm:$0xff]  ;;  %v133_v16 = vld [vmem:[%s286_s11 + $0x80] sm:$0xff]  ;;  %v134_v17 = vld [vmem:[%s286_s11 + $0x88] sm:$0xff] }
  0x14   : > { %154 = vst [vmem:[%s291_s14 + $0x28] sm:$0xff] %v122_v5  ;;  %v135_v18 = vld [vmem:[%s286_s11 + $0x90] sm:$0xff]  ;;  %v136_v19 = vld [vmem:[%s286_s11 + $0x98] sm:$0xff]  ;;  %v137_v20 = vld [vmem:[%s286_s11 + $0xa0] sm:$0xff] }
  0x15   : > { %155 = vst [vmem:[%s291_s14 + $0x30] sm:$0xff] %v123_v6  ;;  %v138_v21 = vld [vmem:[%s286_s11 + $0xa8] sm:$0xff]  ;;  %v139_v22 = vld [vmem:[%s286_s11 + $0xb0] sm:$0xff]  ;;  %v140_v23 = vld [vmem:[%s286_s11 + $0xb8] sm:$0xff] }
  0x16   : > { %156 = vst [vmem:[%s291_s14 + $0x38] sm:$0xff] %v124_v7  ;;  %v141_v24 = vld [vmem:[%s286_s11 + $0xc0] sm:$0xff]  ;;  %v142_v25 = vld [vmem:[%s286_s11 + $0xc8] sm:$0xff]  ;;  %v143_v26 = vld [vmem:[%s286_s11 + $0xd0] sm:$0xff] }
  0x17   : > { %157 = vst [vmem:[%s291_s14 + $0x40] sm:$0xff] %v125_v8  ;;  %v144_v27 = vld [vmem:[%s286_s11 + $0xd8] sm:$0xff]  ;;  %v145_v28 = vld [vmem:[%s286_s11 + $0xe0] sm:$0xff]  ;;  %v146_v29 = vld [vmem:[%s286_s11 + $0xe8] sm:$0xff] }
  0x18   : > { %158 = vst [vmem:[%s291_s14 + $0x48] sm:$0xff] %v126_v9  ;;  %v147_v30 = vld [vmem:[%s286_s11 + $0xf0] sm:$0xff]  ;;  %v148_v31 = vld [vmem:[%s286_s11 + $0xf8] sm:$0xff] }
  0x19   : > { %159 = vst [vmem:[%s291_s14 + $0x50] sm:$0xff] %v127_v10 }
  0x1a   : > { %160 = vst [vmem:[%s291_s14 + $0x58] sm:$0xff] %v128_v11 }
  0x1b   : > { %161 = vst [vmem:[%s291_s14 + $0x60] sm:$0xff] %v129_v12 }
  0x1c   : > { %162 = vst [vmem:[%s291_s14 + $0x68] sm:$0xff] %v130_v13 }
  0x1d   : > { %163 = vst [vmem:[%s291_s14 + $0x70] sm:$0xff] %v131_v14 }
  0x1e   : > { %164 = vst [vmem:[%s291_s14 + $0x78] sm:$0xff] %v132_v15 }
  0x1f   : > { %165 = vst [vmem:[%s291_s14 + $0x80] sm:$0xff] %v133_v16 }
  0x20   : > { %166 = vst [vmem:[%s291_s14 + $0x88] sm:$0xff] %v134_v17 }
  0x21   : > { %167 = vst [vmem:[%s291_s14 + $0x90] sm:$0xff] %v135_v18 }
  0x22   : > { %168 = vst [vmem:[%s291_s14 + $0x98] sm:$0xff] %v136_v19 }
  0x23   : > { %169 = vst [vmem:[%s291_s14 + $0xa0] sm:$0xff] %v137_v20 }
  0x24   : > { %170 = vst [vmem:[%s291_s14 + $0xa8] sm:$0xff] %v138_v21 }
  0x25   : > { %171 = vst [vmem:[%s291_s14 + $0xb0] sm:$0xff] %v139_v22 }
  0x26   : > { %172 = vst [vmem:[%s291_s14 + $0xb8] sm:$0xff] %v140_v23 }
  0x27   : > { %173 = vst [vmem:[%s291_s14 + $0xc0] sm:$0xff] %v141_v24 }
  0x28   : > { %174 = vst [vmem:[%s291_s14 + $0xc8] sm:$0xff] %v142_v25 }
  0x29   : > { %175 = vst [vmem:[%s291_s14 + $0xd0] sm:$0xff] %v143_v26 }
  0x2a   : > { %176 = vst [vmem:[%s291_s14 + $0xd8] sm:$0xff] %v144_v27 }
  0x2b   : > { %177 = vst [vmem:[%s291_s14 + $0xe0] sm:$0xff] %v145_v28 }
  0x2c   : > { %178 = vst [vmem:[%s291_s14 + $0xe8] sm:$0xff] %v146_v29 }
  0x2d   : > { %179 = vst [vmem:[%s291_s14 + $0xf0] sm:$0xff] %v147_v30 }
  0x2e   : > { %180 = vst [vmem:[%s291_s14 + $0xf8] sm:$0xff] %v148_v31 }
  0x2f PF: > { %s11_s6 = sadd.s32 1, %s263_s6  }
  0x30   : > { %p8_p4 = scmp.ge.s32.totalorder %s11_s6, 4  }
  0x32   :  { %10 = sbr.rel (!%p8_p4) target bundleno = 1 (0x1), region = 54 }

</bundles_post_ra>
